<compile_context>
chip_gen: v7x
topology: tpu7x:2x2x1
jax: 0.10.0
libtpu: 0.0.40
codegen_flags: <defaults>
</compile_context>

<pallas_src>
import jax
import jax.numpy as jnp
from jax import lax
from jax.experimental import pallas as pl
from jax.experimental.pallas import tpu as pltpu

HIDDEN    = 32     # hidden_size
VOCAB     = 4      # vocab_size for Dyck(NUM_PAR=2): '(', ')', '[', ']'
OUTPUT    = 4      # output_size
MEM_SIZE  = 104    # memory_size
MEM_DIM   = 1      # memory_dim (kernel assumes MEM_DIM == 1)
N_LAYERS  = 1
STACK_PAD = 128    # memory_size padded onto the 128-lane axis
N_HEAD_COLS = OUTPUT + 2            # [W_y logits (4) | a0-a1 logit (1) | new_elt logit (1)]
FUSED_W     = HIDDEN + N_HEAD_COLS  # fused RHS width: 32 + 6 = 38

assert MEM_SIZE <= STACK_PAD and MEM_DIM == 1


def srnn_seq_kernel(xproj_ref, h0_ref, stack0_ref,
                    wbig_ref, bheads_ref, wsh_whh_ref,
                    out_seq_ref, h_out_ref, stack_out_ref):
    """Runs the full token sequence in one invocation.

    Per-step math (identical to SRNN_Softmax.forward, soft stack path; all nn.Linear
    biases included — b_y/b_a/b_n live in bheads, b_hh + b_sh@W_hh^T in xproj):
      pre      = x W_ih^T + b_ih + b_hh + b_sh W_hh^T            (precomputed in xproj)
                 + h_prev W_hh^T                                  (rec_pre, from prev step)
                 + stack[0] * (W_sh^T W_hh^T)                     (wsh_whh)
      h        = tanh(pre)
      fused    = h @ [W_hh^T | W_y^T | (W_a0-W_a1)^T | W_n^T]
      out[t]   = fused[W_y cols] + b_y                            (sigmoid applied in wrapper)
      aw_push  = sigmoid(a0 - a1)        (== 2-way softmax, exact)
      new_elt  = sigmoid(W_n h + b_n)
      stack    = aw_push*[new_elt; stack[:-1]] + (1-aw_push)*[stack[1:]; 0]
    """
    nsteps = xproj_ref.shape[0]

    # ---- loop-invariant loads / constants (hoisted out of the step loop) ----
    wbig    = wbig_ref[...]                          # (H, FUSED_W) bf16
    bheads  = bheads_ref[...]                        # (1, N_HEAD_COLS) f32
    wsh_whh = wsh_whh_ref[...]                       # (1, H) f32
    col        = lax.broadcasted_iota(jnp.int32, (1, STACK_PAD), 1)
    is_lane0   = col == 0
    valid      = col < MEM_SIZE
    last_valid = col >= MEM_SIZE - 1

    # ---- initial register-resident state ----
    h0     = h0_ref[...]                             # (1, H) f32
    stack0 = stack0_ref[...]                         # (1, STACK_PAD) f32, pad lanes zero
    # rec_pre_0 = h0 @ W_hh^T (first H columns of the fused RHS).
    rec0 = jnp.dot(h0.astype(wbig.dtype), wbig,
                   preferred_element_type=jnp.float32)[:, :HIDDEN]

    def step(t, carry):
        rec_pre, _h_prev, stack = carry

        s0 = stack[:, 0:1]                                             # (1, 1)
        xp = xproj_ref[pl.ds(t, 1), :]                                 # (1, H)
        h  = jnp.tanh(xp + rec_pre + s0 * wsh_whh)                     # (1, H)

        # Single fused MXU op per step: recurrent pre-activation for the NEXT
        # step + all head logits in one (1,H)@(H,FUSED_W) dot (bf16 in, f32 acc).
        fused    = jnp.dot(h.astype(wbig.dtype), wbig,
                           preferred_element_type=jnp.float32)         # (1, FUSED_W)
        rec_next = fused[:, :HIDDEN]                                   # (1, H)
        heads    = fused[:, HIDDEN:] + bheads                          # (1, N_HEAD_COLS)

        # Raw W_y logits; sigmoid is applied outside the serial chain (wrapper).
        out_seq_ref[pl.ds(t, 1), :] = heads[:, :OUTPUT]

        # One sigmoid for both stack gates: [a0-a1 logit, new_elt logit].
        gates   = jax.nn.sigmoid(heads[:, OUTPUT:OUTPUT + 2])          # (1, 2)
        aw_push = gates[:, 0:1]
        new_elt = gates[:, 1:2]
        aw_pop  = 1.0 - aw_push

        # Stack on the lane axis:
        #   push_side = [new_elt; stack[:-1]] -> rotate right 1 lane, write lane 0
        #   pop_side  = [stack[1:]; 0]        -> rotate left 1 lane, zero last valid lane
        push_side = jnp.where(is_lane0, new_elt, pltpu.roll(stack, 1, 1))
        pop_side  = jnp.where(last_valid, 0.0, pltpu.roll(stack, STACK_PAD - 1, 1))
        stack_new = jnp.where(valid, aw_push * push_side + aw_pop * pop_side, 0.0)

        return rec_next, h, stack_new

    unroll = nsteps if nsteps <= 8 else 8
    _, h_fin, stack_fin = lax.fori_loop(0, nsteps, step, (rec0, h0, stack0),
                                        unroll=unroll)

    h_out_ref[...]     = h_fin
    stack_out_ref[...] = stack_fin


def init_params(key):
    ks = jax.random.split(key, 13)

    def u(k, shape, fan_in):
        b = 1.0 / jnp.sqrt(jnp.float32(fan_in))
        return jax.random.uniform(k, shape, jnp.float32, -b, b)

    return {
        "emb":  u(ks[0],  (HIDDEN, VOCAB),   VOCAB),    # nn.Embedding(hidden, vocab)
        "W_ih": u(ks[1],  (HIDDEN, VOCAB),   HIDDEN),   # rnn.weight_ih_l0
        "b_ih": u(ks[2],  (HIDDEN,),         HIDDEN),
        "W_hh": u(ks[3],  (HIDDEN, HIDDEN),  HIDDEN),   # rnn.weight_hh_l0
        "b_hh": u(ks[4],  (HIDDEN,),         HIDDEN),
        "W_y":  u(ks[5],  (OUTPUT, HIDDEN),  HIDDEN),   # W_y
        "b_y":  u(ks[6],  (OUTPUT,),         HIDDEN),
        "W_n":  u(ks[7],  (MEM_DIM, HIDDEN), HIDDEN),   # W_n
        "b_n":  u(ks[8],  (MEM_DIM,),        HIDDEN),
        "W_a":  u(ks[9],  (2, HIDDEN),       HIDDEN),   # W_a
        "b_a":  u(ks[10], (2,),              HIDDEN),
        "W_sh": u(ks[11], (HIDDEN, MEM_DIM), MEM_DIM),  # W_sh
        "b_sh": u(ks[12], (HIDDEN,),         MEM_DIM),
    }


@jax.jit
def srnn_softmax_run_sequence(tokens, hidden0, stack, params):
    """Applies SRNN_Softmax.forward to each token of `tokens`, state carried in-kernel.

    Returns (per-step outputs (T, output_size), final hidden (n_layers,1,H),
             final stack (memory_size, memory_dim)).
    """
    T = tokens.shape[0]
    W_hh_t = params["W_hh"].T                                            # (H, H)

    # ---- W_sh fold (pure linear algebra, done once in the wrapper) ----
    bias_fold = params["b_hh"][None, :] + params["b_sh"][None, :] @ W_hh_t   # (1, H)
    wsh_whh   = (params["W_sh"].T @ W_hh_t).astype(jnp.float32)             # (1, H)

    # Fuse embedding lookup + input projection + all recurrent biases:
    #   xproj[t] = emb[tokens[t]] @ W_ih^T + b_ih + b_hh + b_sh @ W_hh^T   -> (T, H)
    xproj_table = (params["emb"] @ params["W_ih"].T
                   + params["b_ih"][None, :] + bias_fold).astype(jnp.float32)
    xproj = xproj_table[tokens]

    h0 = hidden0.reshape(1, HIDDEN).astype(jnp.float32)

    # Transpose the (M, 1) stack onto the lane axis and pad to 128 lanes.
    stack_row = jnp.zeros((1, STACK_PAD), jnp.float32)
    stack_row = stack_row.at[:, :MEM_SIZE].set(
        stack.astype(jnp.float32).reshape(1, MEM_SIZE))      # valid since MEM_DIM == 1

    # Fused RHS  [W_hh^T | W_y^T | (W_a0 - W_a1)^T | W_n^T]  -> (H, 38), bf16 (f32 acc).
    w_adiff = (params["W_a"][0] - params["W_a"][1])[:, None]             # (H, 1)
    wbig = jnp.concatenate(
        [W_hh_t, params["W_y"].T, w_adiff, params["W_n"].T], axis=1
    ).astype(jnp.bfloat16)                                               # (H, FUSED_W)
    b_adiff = params["b_a"][0:1] - params["b_a"][1:2]
    bheads = jnp.concatenate(
        [params["b_y"], b_adiff, params["b_n"]]).reshape(1, -1).astype(jnp.float32)

    vmem = pl.BlockSpec(memory_space=pltpu.MemorySpace.VMEM)
    args = (xproj, h0, stack_row, wbig, bheads, wsh_whh)

    out_logits, h_fin, stack_fin_row = pl.pallas_call(
        srnn_seq_kernel,
        out_shape=(jax.ShapeDtypeStruct((T, OUTPUT), jnp.float32),
                   jax.ShapeDtypeStruct((1, HIDDEN), jnp.float32),
                   jax.ShapeDtypeStruct((1, STACK_PAD), jnp.float32)),
        in_specs=[vmem] * len(args),
        out_specs=(vmem, vmem, vmem),
    )(*args)

    out_seq = jax.nn.sigmoid(out_logits)   # W_y sigmoid moved off the per-step serial chain
    stack_fin = stack_fin_row[:, :MEM_SIZE].reshape(MEM_SIZE, MEM_DIM)
    return out_seq, h_fin.reshape(N_LAYERS, 1, HIDDEN), stack_fin


if __name__ == "__main__":
    key = jax.random.PRNGKey(0)
    pkey, tkey = jax.random.split(key)
    params = init_params(pkey)

    SEQ_LEN = 8
    tokens  = jax.random.randint(tkey, (SEQ_LEN,), 0, VOCAB)           # token indices
    hidden0 = jnp.zeros((N_LAYERS, 1, HIDDEN), jnp.float32)            # initHidden()
    stack   = jnp.zeros((MEM_SIZE, MEM_DIM), jnp.float32)              # initStack()

    out_seq, hidden, new_stack = srnn_softmax_run_sequence(tokens, hidden0, stack, params)
    jax.block_until_ready((out_seq, hidden, new_stack))

    assert out_seq.shape == (SEQ_LEN, OUTPUT)
    assert hidden.shape == (N_LAYERS, 1, HIDDEN)
    assert new_stack.shape == (MEM_SIZE, MEM_DIM)
    assert bool(jnp.isfinite(out_seq).all())
    assert bool(jnp.isfinite(hidden).all())
    assert bool(jnp.isfinite(new_stack).all())
    print("KERNEL_OK")
</pallas_src>

<mosaic_0001>
module attributes {stable_mosaic.version = 11 : i64} {
  func.func @srnn_seq_kernel(%arg0: memref<8x32xf32, #tpu.memory_space<vmem>>, %arg1: memref<1x32xf32, #tpu.memory_space<vmem>>, %arg2: memref<1x128xf32, #tpu.memory_space<vmem>>, %arg3: memref<32x38xbf16, #tpu.memory_space<vmem>>, %arg4: memref<1x6xf32, #tpu.memory_space<vmem>>, %arg5: memref<1x32xf32, #tpu.memory_space<vmem>>, %arg6: memref<8x4xf32, #tpu.memory_space<vmem>>, %arg7: memref<1x32xf32, #tpu.memory_space<vmem>>, %arg8: memref<1x128xf32, #tpu.memory_space<vmem>>) attributes {dimension_semantics = [], scalar_prefetch = 0 : i64, scratch_operands = 0 : i64, tpu.core_type = #tpu.core_type<tc>} {
    %c0 = arith.constant 0 : index
    %c0_0 = arith.constant 0 : index
    %0 = vector.load %arg3[%c0, %c0_0] : memref<32x38xbf16, #tpu.memory_space<vmem>>, vector<32x38xbf16>
    %c0_1 = arith.constant 0 : index
    %c0_2 = arith.constant 0 : index
    %1 = vector.load %arg4[%c0_1, %c0_2] : memref<1x6xf32, #tpu.memory_space<vmem>>, vector<1x6xf32>
    %c0_3 = arith.constant 0 : index
    %c0_4 = arith.constant 0 : index
    %2 = vector.load %arg5[%c0_3, %c0_4] : memref<1x32xf32, #tpu.memory_space<vmem>>, vector<1x32xf32>
    %3 = tpu.iota {dimensions = array<i32: 1>} : vector<1x128xi32>
    %c0_i32 = arith.constant 0 : i32
    %4 = vector.broadcast %c0_i32 : i32 to vector<1x128xi32>
    %5 = arith.cmpi eq, %3, %4 : vector<1x128xi32>
    %c104_i32 = arith.constant 104 : i32
    %6 = vector.broadcast %c104_i32 : i32 to vector<1x128xi32>
    %7 = arith.cmpi slt, %3, %6 : vector<1x128xi32>
    %c103_i32 = arith.constant 103 : i32
    %8 = vector.broadcast %c103_i32 : i32 to vector<1x128xi32>
    %9 = arith.cmpi sge, %3, %8 : vector<1x128xi32>
    %c0_5 = arith.constant 0 : index
    %c0_6 = arith.constant 0 : index
    %10 = vector.load %arg1[%c0_5, %c0_6] : memref<1x32xf32, #tpu.memory_space<vmem>>, vector<1x32xf32>
    %c0_7 = arith.constant 0 : index
    %c0_8 = arith.constant 0 : index
    %11 = vector.load %arg2[%c0_7, %c0_8] : memref<1x128xf32, #tpu.memory_space<vmem>>, vector<1x128xf32>
    %12 = arith.truncf %10 : vector<1x32xf32> to vector<1x32xbf16>
    %cst = arith.constant dense<0.000000e+00> : vector<1x38xf32>
    %13 = tpu.matmul %12, %0, %cst {dimension_numbers = #tpu.dot_dimension_numbers<[1], [0], [0], [1], [0, 0, 1, 1], [], []>} : vector<1x32xbf16>, vector<32x38xbf16>, vector<1x38xf32> -> vector<1x38xf32>
    %14 = vector.extract_strided_slice %13 {offsets = [0, 0], sizes = [1, 32], strides = [1, 1]} : vector<1x38xf32> to vector<1x32xf32>
    %c0_i32_9 = arith.constant 0 : i32
    %15 = vector.extract_strided_slice %11 {offsets = [0, 0], sizes = [1, 1], strides = [1, 1]} : vector<1x128xf32> to vector<1x1xf32>
    %16 = arith.index_cast %c0_i32_9 : i32 to index
    %c0_10 = arith.constant 0 : index
    %17 = vector.load %arg0[%16, %c0_10] : memref<8x32xf32, #tpu.memory_space<vmem>>, vector<1x32xf32>
    %18 = arith.addf %17, %14 : vector<1x32xf32>
    %19 = vector.broadcast %15 : vector<1x1xf32> to vector<1x32xf32>
    %20 = arith.mulf %19, %2 : vector<1x32xf32>
    %21 = arith.addf %18, %20 : vector<1x32xf32>
    %22 = math.tanh %21 : vector<1x32xf32>
    %23 = arith.truncf %22 : vector<1x32xf32> to vector<1x32xbf16>
    %cst_11 = arith.constant dense<0.000000e+00> : vector<1x38xf32>
    %24 = tpu.matmul %23, %0, %cst_11 {dimension_numbers = #tpu.dot_dimension_numbers<[1], [0], [0], [1], [0, 0, 1, 1], [], []>} : vector<1x32xbf16>, vector<32x38xbf16>, vector<1x38xf32> -> vector<1x38xf32>
    %25 = vector.extract_strided_slice %24 {offsets = [0, 0], sizes = [1, 32], strides = [1, 1]} : vector<1x38xf32> to vector<1x32xf32>
    %26 = vector.extract_strided_slice %24 {offsets = [0, 32], sizes = [1, 6], strides = [1, 1]} : vector<1x38xf32> to vector<1x6xf32>
    %27 = arith.addf %26, %1 : vector<1x6xf32>
    %28 = vector.extract_strided_slice %27 {offsets = [0, 0], sizes = [1, 4], strides = [1, 1]} : vector<1x6xf32> to vector<1x4xf32>
    %29 = arith.index_cast %c0_i32_9 : i32 to index
    %c0_12 = arith.constant 0 : index
    %30 = vector.load %arg6[%29, %c0_12] : memref<8x4xf32, #tpu.memory_space<vmem>>, vector<1x4xf32>
    tpu.vector_store %arg6[%29, %c0_12], %28 {strides = array<i32>} : memref<8x4xf32, #tpu.memory_space<vmem>>, vector<1x4xf32>,
    %31 = vector.extract_strided_slice %27 {offsets = [0, 4], sizes = [1, 2], strides = [1, 1]} : vector<1x6xf32> to vector<1x2xf32>
    %32 = arith.negf %31 : vector<1x2xf32>
    %33 = math.exp %32 : vector<1x2xf32>
    %cst_13 = arith.constant 1.000000e+00 : f32
    %34 = vector.broadcast %cst_13 : f32 to vector<1x2xf32>
    %35 = arith.addf %34, %33 : vector<1x2xf32>
    %36 = arith.divf %34, %35 : vector<1x2xf32>
    %37 = vector.extract_strided_slice %36 {offsets = [0, 0], sizes = [1, 1], strides = [1, 1]} : vector<1x2xf32> to vector<1x1xf32>
    %38 = vector.extract_strided_slice %36 {offsets = [0, 1], sizes = [1, 1], strides = [1, 1]} : vector<1x2xf32> to vector<1x1xf32>
    %cst_14 = arith.constant 1.000000e+00 : f32
    %39 = vector.broadcast %cst_14 : f32 to vector<1x1xf32>
    %40 = arith.subf %39, %37 : vector<1x1xf32>
    %c1_i32 = arith.constant 1 : i32
    %41 = tpu.dynamic_rotate %11 by %c1_i32 dim 1 : vector<1x128xf32>, i32 -> vector<1x128xf32>
    %42 = vector.shape_cast %38 : vector<1x1xf32> to vector<1x1xf32>
    %43 = vector.broadcast %42 : vector<1x1xf32> to vector<1x128xf32>
    %44 = arith.select %5, %43, %41 : vector<1x128xi1>, vector<1x128xf32>
    %c127_i32 = arith.constant 127 : i32
    %45 = tpu.dynamic_rotate %11 by %c127_i32 dim 1 : vector<1x128xf32>, i32 -> vector<1x128xf32>
    %cst_15 = arith.constant 0.000000e+00 : f32
    %46 = vector.broadcast %cst_15 : f32 to vector<1x128xf32>
    %47 = arith.select %9, %46, %45 : vector<1x128xi1>, vector<1x128xf32>
    %48 = vector.broadcast %37 : vector<1x1xf32> to vector<1x128xf32>
    %49 = arith.mulf %48, %44 : vector<1x128xf32>
    %50 = vector.broadcast %40 : vector<1x1xf32> to vector<1x128xf32>
    %51 = arith.mulf %50, %47 : vector<1x128xf32>
    %52 = arith.addf %49, %51 : vector<1x128xf32>
    %cst_16 = arith.constant 0.000000e+00 : f32
    %53 = vector.broadcast %cst_16 : f32 to vector<1x128xf32>
    %54 = arith.select %7, %52, %53 : vector<1x128xi1>, vector<1x128xf32>
    %c1_i32_17 = arith.constant 1 : i32
    %55 = vector.extract_strided_slice %54 {offsets = [0, 0], sizes = [1, 1], strides = [1, 1]} : vector<1x128xf32> to vector<1x1xf32>
    %56 = arith.index_cast %c1_i32_17 : i32 to index
    %c0_18 = arith.constant 0 : index
    %57 = vector.load %arg0[%56, %c0_18] : memref<8x32xf32, #tpu.memory_space<vmem>>, vector<1x32xf32>
    %58 = arith.addf %57, %25 : vector<1x32xf32>
    %59 = vector.broadcast %55 : vector<1x1xf32> to vector<1x32xf32>
    %60 = arith.mulf %59, %2 : vector<1x32xf32>
    %61 = arith.addf %58, %60 : vector<1x32xf32>
    %62 = math.tanh %61 : vector<1x32xf32>
    %63 = arith.truncf %62 : vector<1x32xf32> to vector<1x32xbf16>
    %cst_19 = arith.constant dense<0.000000e+00> : vector<1x38xf32>
    %64 = tpu.matmul %63, %0, %cst_19 {dimension_numbers = #tpu.dot_dimension_numbers<[1], [0], [0], [1], [0, 0, 1, 1], [], []>} : vector<1x32xbf16>, vector<32x38xbf16>, vector<1x38xf32> -> vector<1x38xf32>
    %65 = vector.extract_strided_slice %64 {offsets = [0, 0], sizes = [1, 32], strides = [1, 1]} : vector<1x38xf32> to vector<1x32xf32>
    %66 = vector.extract_strided_slice %64 {offsets = [0, 32], sizes = [1, 6], strides = [1, 1]} : vector<1x38xf32> to vector<1x6xf32>
    %67 = arith.addf %66, %1 : vector<1x6xf32>
    %68 = vector.extract_strided_slice %67 {offsets = [0, 0], sizes = [1, 4], strides = [1, 1]} : vector<1x6xf32> to vector<1x4xf32>
    %69 = arith.index_cast %c1_i32_17 : i32 to index
    %c0_20 = arith.constant 0 : index
    %70 = vector.load %arg6[%69, %c0_20] : memref<8x4xf32, #tpu.memory_space<vmem>>, vector<1x4xf32>
    tpu.vector_store %arg6[%69, %c0_20], %68 {strides = array<i32>} : memref<8x4xf32, #tpu.memory_space<vmem>>, vector<1x4xf32>,
    %71 = vector.extract_strided_slice %67 {offsets = [0, 4], sizes = [1, 2], strides = [1, 1]} : vector<1x6xf32> to vector<1x2xf32>
    %72 = arith.negf %71 : vector<1x2xf32>
    %73 = math.exp %72 : vector<1x2xf32>
    %cst_21 = arith.constant 1.000000e+00 : f32
    %74 = vector.broadcast %cst_21 : f32 to vector<1x2xf32>
    %75 = arith.addf %74, %73 : vector<1x2xf32>
    %76 = arith.divf %74, %75 : vector<1x2xf32>
    %77 = vector.extract_strided_slice %76 {offsets = [0, 0], sizes = [1, 1], strides = [1, 1]} : vector<1x2xf32> to vector<1x1xf32>
    %78 = vector.extract_strided_slice %76 {offsets = [0, 1], sizes = [1, 1], strides = [1, 1]} : vector<1x2xf32> to vector<1x1xf32>
    %cst_22 = arith.constant 1.000000e+00 : f32
    %79 = vector.broadcast %cst_22 : f32 to vector<1x1xf32>
    %80 = arith.subf %79, %77 : vector<1x1xf32>
    %c1_i32_23 = arith.constant 1 : i32
    %81 = tpu.dynamic_rotate %54 by %c1_i32_23 dim 1 : vector<1x128xf32>, i32 -> vector<1x128xf32>
    %82 = vector.shape_cast %78 : vector<1x1xf32> to vector<1x1xf32>
    %83 = vector.broadcast %82 : vector<1x1xf32> to vector<1x128xf32>
    %84 = arith.select %5, %83, %81 : vector<1x128xi1>, vector<1x128xf32>
    %c127_i32_24 = arith.constant 127 : i32
    %85 = tpu.dynamic_rotate %54 by %c127_i32_24 dim 1 : vector<1x128xf32>, i32 -> vector<1x128xf32>
    %cst_25 = arith.constant 0.000000e+00 : f32
    %86 = vector.broadcast %cst_25 : f32 to vector<1x128xf32>
    %87 = arith.select %9, %86, %85 : vector<1x128xi1>, vector<1x128xf32>
    %88 = vector.broadcast %77 : vector<1x1xf32> to vector<1x128xf32>
    %89 = arith.mulf %88, %84 : vector<1x128xf32>
    %90 = vector.broadcast %80 : vector<1x1xf32> to vector<1x128xf32>
    %91 = arith.mulf %90, %87 : vector<1x128xf32>
    %92 = arith.addf %89, %91 : vector<1x128xf32>
    %cst_26 = arith.constant 0.000000e+00 : f32
    %93 = vector.broadcast %cst_26 : f32 to vector<1x128xf32>
    %94 = arith.select %7, %92, %93 : vector<1x128xi1>, vector<1x128xf32>
    %c2_i32 = arith.constant 2 : i32
    %95 = vector.extract_strided_slice %94 {offsets = [0, 0], sizes = [1, 1], strides = [1, 1]} : vector<1x128xf32> to vector<1x1xf32>
    %96 = arith.index_cast %c2_i32 : i32 to index
    %c0_27 = arith.constant 0 : index
    %97 = vector.load %arg0[%96, %c0_27] : memref<8x32xf32, #tpu.memory_space<vmem>>, vector<1x32xf32>
    %98 = arith.addf %97, %65 : vector<1x32xf32>
    %99 = vector.broadcast %95 : vector<1x1xf32> to vector<1x32xf32>
    %100 = arith.mulf %99, %2 : vector<1x32xf32>
    %101 = arith.addf %98, %100 : vector<1x32xf32>
    %102 = math.tanh %101 : vector<1x32xf32>
    %103 = arith.truncf %102 : vector<1x32xf32> to vector<1x32xbf16>
    %cst_28 = arith.constant dense<0.000000e+00> : vector<1x38xf32>
    %104 = tpu.matmul %103, %0, %cst_28 {dimension_numbers = #tpu.dot_dimension_numbers<[1], [0], [0], [1], [0, 0, 1, 1], [], []>} : vector<1x32xbf16>, vector<32x38xbf16>, vector<1x38xf32> -> vector<1x38xf32>
    %105 = vector.extract_strided_slice %104 {offsets = [0, 0], sizes = [1, 32], strides = [1, 1]} : vector<1x38xf32> to vector<1x32xf32>
    %106 = vector.extract_strided_slice %104 {offsets = [0, 32], sizes = [1, 6], strides = [1, 1]} : vector<1x38xf32> to vector<1x6xf32>
    %107 = arith.addf %106, %1 : vector<1x6xf32>
    %108 = vector.extract_strided_slice %107 {offsets = [0, 0], sizes = [1, 4], strides = [1, 1]} : vector<1x6xf32> to vector<1x4xf32>
    %109 = arith.index_cast %c2_i32 : i32 to index
    %c0_29 = arith.constant 0 : index
    %110 = vector.load %arg6[%109, %c0_29] : memref<8x4xf32, #tpu.memory_space<vmem>>, vector<1x4xf32>
    tpu.vector_store %arg6[%109, %c0_29], %108 {strides = array<i32>} : memref<8x4xf32, #tpu.memory_space<vmem>>, vector<1x4xf32>,
    %111 = vector.extract_strided_slice %107 {offsets = [0, 4], sizes = [1, 2], strides = [1, 1]} : vector<1x6xf32> to vector<1x2xf32>
    %112 = arith.negf %111 : vector<1x2xf32>
    %113 = math.exp %112 : vector<1x2xf32>
    %cst_30 = arith.constant 1.000000e+00 : f32
    %114 = vector.broadcast %cst_30 : f32 to vector<1x2xf32>
    %115 = arith.addf %114, %113 : vector<1x2xf32>
    %116 = arith.divf %114, %115 : vector<1x2xf32>
    %117 = vector.extract_strided_slice %116 {offsets = [0, 0], sizes = [1, 1], strides = [1, 1]} : vector<1x2xf32> to vector<1x1xf32>
    %118 = vector.extract_strided_slice %116 {offsets = [0, 1], sizes = [1, 1], strides = [1, 1]} : vector<1x2xf32> to vector<1x1xf32>
    %cst_31 = arith.constant 1.000000e+00 : f32
    %119 = vector.broadcast %cst_31 : f32 to vector<1x1xf32>
    %120 = arith.subf %119, %117 : vector<1x1xf32>
    %c1_i32_32 = arith.constant 1 : i32
    %121 = tpu.dynamic_rotate %94 by %c1_i32_32 dim 1 : vector<1x128xf32>, i32 -> vector<1x128xf32>
    %122 = vector.shape_cast %118 : vector<1x1xf32> to vector<1x1xf32>
    %123 = vector.broadcast %122 : vector<1x1xf32> to vector<1x128xf32>
    %124 = arith.select %5, %123, %121 : vector<1x128xi1>, vector<1x128xf32>
    %c127_i32_33 = arith.constant 127 : i32
    %125 = tpu.dynamic_rotate %94 by %c127_i32_33 dim 1 : vector<1x128xf32>, i32 -> vector<1x128xf32>
    %cst_34 = arith.constant 0.000000e+00 : f32
    %126 = vector.broadcast %cst_34 : f32 to vector<1x128xf32>
    %127 = arith.select %9, %126, %125 : vector<1x128xi1>, vector<1x128xf32>
    %128 = vector.broadcast %117 : vector<1x1xf32> to vector<1x128xf32>
    %129 = arith.mulf %128, %124 : vector<1x128xf32>
    %130 = vector.broadcast %120 : vector<1x1xf32> to vector<1x128xf32>
    %131 = arith.mulf %130, %127 : vector<1x128xf32>
    %132 = arith.addf %129, %131 : vector<1x128xf32>
    %cst_35 = arith.constant 0.000000e+00 : f32
    %133 = vector.broadcast %cst_35 : f32 to vector<1x128xf32>
    %134 = arith.select %7, %132, %133 : vector<1x128xi1>, vector<1x128xf32>
    %c3_i32 = arith.constant 3 : i32
    %135 = vector.extract_strided_slice %134 {offsets = [0, 0], sizes = [1, 1], strides = [1, 1]} : vector<1x128xf32> to vector<1x1xf32>
    %136 = arith.index_cast %c3_i32 : i32 to index
    %c0_36 = arith.constant 0 : index
    %137 = vector.load %arg0[%136, %c0_36] : memref<8x32xf32, #tpu.memory_space<vmem>>, vector<1x32xf32>
    %138 = arith.addf %137, %105 : vector<1x32xf32>
    %139 = vector.broadcast %135 : vector<1x1xf32> to vector<1x32xf32>
    %140 = arith.mulf %139, %2 : vector<1x32xf32>
    %141 = arith.addf %138, %140 : vector<1x32xf32>
    %142 = math.tanh %141 : vector<1x32xf32>
    %143 = arith.truncf %142 : vector<1x32xf32> to vector<1x32xbf16>
    %cst_37 = arith.constant dense<0.000000e+00> : vector<1x38xf32>
    %144 = tpu.matmul %143, %0, %cst_37 {dimension_numbers = #tpu.dot_dimension_numbers<[1], [0], [0], [1], [0, 0, 1, 1], [], []>} : vector<1x32xbf16>, vector<32x38xbf16>, vector<1x38xf32> -> vector<1x38xf32>
    %145 = vector.extract_strided_slice %144 {offsets = [0, 0], sizes = [1, 32], strides = [1, 1]} : vector<1x38xf32> to vector<1x32xf32>
    %146 = vector.extract_strided_slice %144 {offsets = [0, 32], sizes = [1, 6], strides = [1, 1]} : vector<1x38xf32> to vector<1x6xf32>
    %147 = arith.addf %146, %1 : vector<1x6xf32>
    %148 = vector.extract_strided_slice %147 {offsets = [0, 0], sizes = [1, 4], strides = [1, 1]} : vector<1x6xf32> to vector<1x4xf32>
    %149 = arith.index_cast %c3_i32 : i32 to index
    %c0_38 = arith.constant 0 : index
    %150 = vector.load %arg6[%149, %c0_38] : memref<8x4xf32, #tpu.memory_space<vmem>>, vector<1x4xf32>
    tpu.vector_store %arg6[%149, %c0_38], %148 {strides = array<i32>} : memref<8x4xf32, #tpu.memory_space<vmem>>, vector<1x4xf32>,
    %151 = vector.extract_strided_slice %147 {offsets = [0, 4], sizes = [1, 2], strides = [1, 1]} : vector<1x6xf32> to vector<1x2xf32>
    %152 = arith.negf %151 : vector<1x2xf32>
    %153 = math.exp %152 : vector<1x2xf32>
    %cst_39 = arith.constant 1.000000e+00 : f32
    %154 = vector.broadcast %cst_39 : f32 to vector<1x2xf32>
    %155 = arith.addf %154, %153 : vector<1x2xf32>
    %156 = arith.divf %154, %155 : vector<1x2xf32>
    %157 = vector.extract_strided_slice %156 {offsets = [0, 0], sizes = [1, 1], strides = [1, 1]} : vector<1x2xf32> to vector<1x1xf32>
    %158 = vector.extract_strided_slice %156 {offsets = [0, 1], sizes = [1, 1], strides = [1, 1]} : vector<1x2xf32> to vector<1x1xf32>
    %cst_40 = arith.constant 1.000000e+00 : f32
    %159 = vector.broadcast %cst_40 : f32 to vector<1x1xf32>
    %160 = arith.subf %159, %157 : vector<1x1xf32>
    %c1_i32_41 = arith.constant 1 : i32
    %161 = tpu.dynamic_rotate %134 by %c1_i32_41 dim 1 : vector<1x128xf32>, i32 -> vector<1x128xf32>
    %162 = vector.shape_cast %158 : vector<1x1xf32> to vector<1x1xf32>
    %163 = vector.broadcast %162 : vector<1x1xf32> to vector<1x128xf32>
    %164 = arith.select %5, %163, %161 : vector<1x128xi1>, vector<1x128xf32>
    %c127_i32_42 = arith.constant 127 : i32
    %165 = tpu.dynamic_rotate %134 by %c127_i32_42 dim 1 : vector<1x128xf32>, i32 -> vector<1x128xf32>
    %cst_43 = arith.constant 0.000000e+00 : f32
    %166 = vector.broadcast %cst_43 : f32 to vector<1x128xf32>
    %167 = arith.select %9, %166, %165 : vector<1x128xi1>, vector<1x128xf32>
    %168 = vector.broadcast %157 : vector<1x1xf32> to vector<1x128xf32>
    %169 = arith.mulf %168, %164 : vector<1x128xf32>
    %170 = vector.broadcast %160 : vector<1x1xf32> to vector<1x128xf32>
    %171 = arith.mulf %170, %167 : vector<1x128xf32>
    %172 = arith.addf %169, %171 : vector<1x128xf32>
    %cst_44 = arith.constant 0.000000e+00 : f32
    %173 = vector.broadcast %cst_44 : f32 to vector<1x128xf32>
    %174 = arith.select %7, %172, %173 : vector<1x128xi1>, vector<1x128xf32>
    %c4_i32 = arith.constant 4 : i32
    %175 = vector.extract_strided_slice %174 {offsets = [0, 0], sizes = [1, 1], strides = [1, 1]} : vector<1x128xf32> to vector<1x1xf32>
    %176 = arith.index_cast %c4_i32 : i32 to index
    %c0_45 = arith.constant 0 : index
    %177 = vector.load %arg0[%176, %c0_45] : memref<8x32xf32, #tpu.memory_space<vmem>>, vector<1x32xf32>
    %178 = arith.addf %177, %145 : vector<1x32xf32>
    %179 = vector.broadcast %175 : vector<1x1xf32> to vector<1x32xf32>
    %180 = arith.mulf %179, %2 : vector<1x32xf32>
    %181 = arith.addf %178, %180 : vector<1x32xf32>
    %182 = math.tanh %181 : vector<1x32xf32>
    %183 = arith.truncf %182 : vector<1x32xf32> to vector<1x32xbf16>
    %cst_46 = arith.constant dense<0.000000e+00> : vector<1x38xf32>
    %184 = tpu.matmul %183, %0, %cst_46 {dimension_numbers = #tpu.dot_dimension_numbers<[1], [0], [0], [1], [0, 0, 1, 1], [], []>} : vector<1x32xbf16>, vector<32x38xbf16>, vector<1x38xf32> -> vector<1x38xf32>
    %185 = vector.extract_strided_slice %184 {offsets = [0, 0], sizes = [1, 32], strides = [1, 1]} : vector<1x38xf32> to vector<1x32xf32>
    %186 = vector.extract_strided_slice %184 {offsets = [0, 32], sizes = [1, 6], strides = [1, 1]} : vector<1x38xf32> to vector<1x6xf32>
    %187 = arith.addf %186, %1 : vector<1x6xf32>
    %188 = vector.extract_strided_slice %187 {offsets = [0, 0], sizes = [1, 4], strides = [1, 1]} : vector<1x6xf32> to vector<1x4xf32>
    %189 = arith.index_cast %c4_i32 : i32 to index
    %c0_47 = arith.constant 0 : index
    %190 = vector.load %arg6[%189, %c0_47] : memref<8x4xf32, #tpu.memory_space<vmem>>, vector<1x4xf32>
    tpu.vector_store %arg6[%189, %c0_47], %188 {strides = array<i32>} : memref<8x4xf32, #tpu.memory_space<vmem>>, vector<1x4xf32>,
    %191 = vector.extract_strided_slice %187 {offsets = [0, 4], sizes = [1, 2], strides = [1, 1]} : vector<1x6xf32> to vector<1x2xf32>
    %192 = arith.negf %191 : vector<1x2xf32>
    %193 = math.exp %192 : vector<1x2xf32>
    %cst_48 = arith.constant 1.000000e+00 : f32
    %194 = vector.broadcast %cst_48 : f32 to vector<1x2xf32>
    %195 = arith.addf %194, %193 : vector<1x2xf32>
    %196 = arith.divf %194, %195 : vector<1x2xf32>
    %197 = vector.extract_strided_slice %196 {offsets = [0, 0], sizes = [1, 1], strides = [1, 1]} : vector<1x2xf32> to vector<1x1xf32>
    %198 = vector.extract_strided_slice %196 {offsets = [0, 1], sizes = [1, 1], strides = [1, 1]} : vector<1x2xf32> to vector<1x1xf32>
    %cst_49 = arith.constant 1.000000e+00 : f32
    %199 = vector.broadcast %cst_49 : f32 to vector<1x1xf32>
    %200 = arith.subf %199, %197 : vector<1x1xf32>
    %c1_i32_50 = arith.constant 1 : i32
    %201 = tpu.dynamic_rotate %174 by %c1_i32_50 dim 1 : vector<1x128xf32>, i32 -> vector<1x128xf32>
    %202 = vector.shape_cast %198 : vector<1x1xf32> to vector<1x1xf32>
    %203 = vector.broadcast %202 : vector<1x1xf32> to vector<1x128xf32>
    %204 = arith.select %5, %203, %201 : vector<1x128xi1>, vector<1x128xf32>
    %c127_i32_51 = arith.constant 127 : i32
    %205 = tpu.dynamic_rotate %174 by %c127_i32_51 dim 1 : vector<1x128xf32>, i32 -> vector<1x128xf32>
    %cst_52 = arith.constant 0.000000e+00 : f32
    %206 = vector.broadcast %cst_52 : f32 to vector<1x128xf32>
    %207 = arith.select %9, %206, %205 : vector<1x128xi1>, vector<1x128xf32>
    %208 = vector.broadcast %197 : vector<1x1xf32> to vector<1x128xf32>
    %209 = arith.mulf %208, %204 : vector<1x128xf32>
    %210 = vector.broadcast %200 : vector<1x1xf32> to vector<1x128xf32>
    %211 = arith.mulf %210, %207 : vector<1x128xf32>
    %212 = arith.addf %209, %211 : vector<1x128xf32>
    %cst_53 = arith.constant 0.000000e+00 : f32
    %213 = vector.broadcast %cst_53 : f32 to vector<1x128xf32>
    %214 = arith.select %7, %212, %213 : vector<1x128xi1>, vector<1x128xf32>
    %c5_i32 = arith.constant 5 : i32
    %215 = vector.extract_strided_slice %214 {offsets = [0, 0], sizes = [1, 1], strides = [1, 1]} : vector<1x128xf32> to vector<1x1xf32>
    %216 = arith.index_cast %c5_i32 : i32 to index
    %c0_54 = arith.constant 0 : index
    %217 = vector.load %arg0[%216, %c0_54] : memref<8x32xf32, #tpu.memory_space<vmem>>, vector<1x32xf32>
    %218 = arith.addf %217, %185 : vector<1x32xf32>
    %219 = vector.broadcast %215 : vector<1x1xf32> to vector<1x32xf32>
    %220 = arith.mulf %219, %2 : vector<1x32xf32>
    %221 = arith.addf %218, %220 : vector<1x32xf32>
    %222 = math.tanh %221 : vector<1x32xf32>
    %223 = arith.truncf %222 : vector<1x32xf32> to vector<1x32xbf16>
    %cst_55 = arith.constant dense<0.000000e+00> : vector<1x38xf32>
    %224 = tpu.matmul %223, %0, %cst_55 {dimension_numbers = #tpu.dot_dimension_numbers<[1], [0], [0], [1], [0, 0, 1, 1], [], []>} : vector<1x32xbf16>, vector<32x38xbf16>, vector<1x38xf32> -> vector<1x38xf32>
    %225 = vector.extract_strided_slice %224 {offsets = [0, 0], sizes = [1, 32], strides = [1, 1]} : vector<1x38xf32> to vector<1x32xf32>
    %226 = vector.extract_strided_slice %224 {offsets = [0, 32], sizes = [1, 6], strides = [1, 1]} : vector<1x38xf32> to vector<1x6xf32>
    %227 = arith.addf %226, %1 : vector<1x6xf32>
    %228 = vector.extract_strided_slice %227 {offsets = [0, 0], sizes = [1, 4], strides = [1, 1]} : vector<1x6xf32> to vector<1x4xf32>
    %229 = arith.index_cast %c5_i32 : i32 to index
    %c0_56 = arith.constant 0 : index
    %230 = vector.load %arg6[%229, %c0_56] : memref<8x4xf32, #tpu.memory_space<vmem>>, vector<1x4xf32>
    tpu.vector_store %arg6[%229, %c0_56], %228 {strides = array<i32>} : memref<8x4xf32, #tpu.memory_space<vmem>>, vector<1x4xf32>,
    %231 = vector.extract_strided_slice %227 {offsets = [0, 4], sizes = [1, 2], strides = [1, 1]} : vector<1x6xf32> to vector<1x2xf32>
    %232 = arith.negf %231 : vector<1x2xf32>
    %233 = math.exp %232 : vector<1x2xf32>
    %cst_57 = arith.constant 1.000000e+00 : f32
    %234 = vector.broadcast %cst_57 : f32 to vector<1x2xf32>
    %235 = arith.addf %234, %233 : vector<1x2xf32>
    %236 = arith.divf %234, %235 : vector<1x2xf32>
    %237 = vector.extract_strided_slice %236 {offsets = [0, 0], sizes = [1, 1], strides = [1, 1]} : vector<1x2xf32> to vector<1x1xf32>
    %238 = vector.extract_strided_slice %236 {offsets = [0, 1], sizes = [1, 1], strides = [1, 1]} : vector<1x2xf32> to vector<1x1xf32>
    %cst_58 = arith.constant 1.000000e+00 : f32
    %239 = vector.broadcast %cst_58 : f32 to vector<1x1xf32>
    %240 = arith.subf %239, %237 : vector<1x1xf32>
    %c1_i32_59 = arith.constant 1 : i32
    %241 = tpu.dynamic_rotate %214 by %c1_i32_59 dim 1 : vector<1x128xf32>, i32 -> vector<1x128xf32>
    %242 = vector.shape_cast %238 : vector<1x1xf32> to vector<1x1xf32>
    %243 = vector.broadcast %242 : vector<1x1xf32> to vector<1x128xf32>
    %244 = arith.select %5, %243, %241 : vector<1x128xi1>, vector<1x128xf32>
    %c127_i32_60 = arith.constant 127 : i32
    %245 = tpu.dynamic_rotate %214 by %c127_i32_60 dim 1 : vector<1x128xf32>, i32 -> vector<1x128xf32>
    %cst_61 = arith.constant 0.000000e+00 : f32
    %246 = vector.broadcast %cst_61 : f32 to vector<1x128xf32>
    %247 = arith.select %9, %246, %245 : vector<1x128xi1>, vector<1x128xf32>
    %248 = vector.broadcast %237 : vector<1x1xf32> to vector<1x128xf32>
    %249 = arith.mulf %248, %244 : vector<1x128xf32>
    %250 = vector.broadcast %240 : vector<1x1xf32> to vector<1x128xf32>
    %251 = arith.mulf %250, %247 : vector<1x128xf32>
    %252 = arith.addf %249, %251 : vector<1x128xf32>
    %cst_62 = arith.constant 0.000000e+00 : f32
    %253 = vector.broadcast %cst_62 : f32 to vector<1x128xf32>
    %254 = arith.select %7, %252, %253 : vector<1x128xi1>, vector<1x128xf32>
    %c6_i32 = arith.constant 6 : i32
    %255 = vector.extract_strided_slice %254 {offsets = [0, 0], sizes = [1, 1], strides = [1, 1]} : vector<1x128xf32> to vector<1x1xf32>
    %256 = arith.index_cast %c6_i32 : i32 to index
    %c0_63 = arith.constant 0 : index
    %257 = vector.load %arg0[%256, %c0_63] : memref<8x32xf32, #tpu.memory_space<vmem>>, vector<1x32xf32>
    %258 = arith.addf %257, %225 : vector<1x32xf32>
    %259 = vector.broadcast %255 : vector<1x1xf32> to vector<1x32xf32>
    %260 = arith.mulf %259, %2 : vector<1x32xf32>
    %261 = arith.addf %258, %260 : vector<1x32xf32>
    %262 = math.tanh %261 : vector<1x32xf32>
    %263 = arith.truncf %262 : vector<1x32xf32> to vector<1x32xbf16>
    %cst_64 = arith.constant dense<0.000000e+00> : vector<1x38xf32>
    %264 = tpu.matmul %263, %0, %cst_64 {dimension_numbers = #tpu.dot_dimension_numbers<[1], [0], [0], [1], [0, 0, 1, 1], [], []>} : vector<1x32xbf16>, vector<32x38xbf16>, vector<1x38xf32> -> vector<1x38xf32>
    %265 = vector.extract_strided_slice %264 {offsets = [0, 0], sizes = [1, 32], strides = [1, 1]} : vector<1x38xf32> to vector<1x32xf32>
    %266 = vector.extract_strided_slice %264 {offsets = [0, 32], sizes = [1, 6], strides = [1, 1]} : vector<1x38xf32> to vector<1x6xf32>
    %267 = arith.addf %266, %1 : vector<1x6xf32>
    %268 = vector.extract_strided_slice %267 {offsets = [0, 0], sizes = [1, 4], strides = [1, 1]} : vector<1x6xf32> to vector<1x4xf32>
    %269 = arith.index_cast %c6_i32 : i32 to index
    %c0_65 = arith.constant 0 : index
    %270 = vector.load %arg6[%269, %c0_65] : memref<8x4xf32, #tpu.memory_space<vmem>>, vector<1x4xf32>
    tpu.vector_store %arg6[%269, %c0_65], %268 {strides = array<i32>} : memref<8x4xf32, #tpu.memory_space<vmem>>, vector<1x4xf32>,
    %271 = vector.extract_strided_slice %267 {offsets = [0, 4], sizes = [1, 2], strides = [1, 1]} : vector<1x6xf32> to vector<1x2xf32>
    %272 = arith.negf %271 : vector<1x2xf32>
    %273 = math.exp %272 : vector<1x2xf32>
    %cst_66 = arith.constant 1.000000e+00 : f32
    %274 = vector.broadcast %cst_66 : f32 to vector<1x2xf32>
    %275 = arith.addf %274, %273 : vector<1x2xf32>
    %276 = arith.divf %274, %275 : vector<1x2xf32>
    %277 = vector.extract_strided_slice %276 {offsets = [0, 0], sizes = [1, 1], strides = [1, 1]} : vector<1x2xf32> to vector<1x1xf32>
    %278 = vector.extract_strided_slice %276 {offsets = [0, 1], sizes = [1, 1], strides = [1, 1]} : vector<1x2xf32> to vector<1x1xf32>
    %cst_67 = arith.constant 1.000000e+00 : f32
    %279 = vector.broadcast %cst_67 : f32 to vector<1x1xf32>
    %280 = arith.subf %279, %277 : vector<1x1xf32>
    %c1_i32_68 = arith.constant 1 : i32
    %281 = tpu.dynamic_rotate %254 by %c1_i32_68 dim 1 : vector<1x128xf32>, i32 -> vector<1x128xf32>
    %282 = vector.shape_cast %278 : vector<1x1xf32> to vector<1x1xf32>
    %283 = vector.broadcast %282 : vector<1x1xf32> to vector<1x128xf32>
    %284 = arith.select %5, %283, %281 : vector<1x128xi1>, vector<1x128xf32>
    %c127_i32_69 = arith.constant 127 : i32
    %285 = tpu.dynamic_rotate %254 by %c127_i32_69 dim 1 : vector<1x128xf32>, i32 -> vector<1x128xf32>
    %cst_70 = arith.constant 0.000000e+00 : f32
    %286 = vector.broadcast %cst_70 : f32 to vector<1x128xf32>
    %287 = arith.select %9, %286, %285 : vector<1x128xi1>, vector<1x128xf32>
    %288 = vector.broadcast %277 : vector<1x1xf32> to vector<1x128xf32>
    %289 = arith.mulf %288, %284 : vector<1x128xf32>
    %290 = vector.broadcast %280 : vector<1x1xf32> to vector<1x128xf32>
    %291 = arith.mulf %290, %287 : vector<1x128xf32>
    %292 = arith.addf %289, %291 : vector<1x128xf32>
    %cst_71 = arith.constant 0.000000e+00 : f32
    %293 = vector.broadcast %cst_71 : f32 to vector<1x128xf32>
    %294 = arith.select %7, %292, %293 : vector<1x128xi1>, vector<1x128xf32>
    %c7_i32 = arith.constant 7 : i32
    %295 = vector.extract_strided_slice %294 {offsets = [0, 0], sizes = [1, 1], strides = [1, 1]} : vector<1x128xf32> to vector<1x1xf32>
    %296 = arith.index_cast %c7_i32 : i32 to index
    %c0_72 = arith.constant 0 : index
    %297 = vector.load %arg0[%296, %c0_72] : memref<8x32xf32, #tpu.memory_space<vmem>>, vector<1x32xf32>
    %298 = arith.addf %297, %265 : vector<1x32xf32>
    %299 = vector.broadcast %295 : vector<1x1xf32> to vector<1x32xf32>
    %300 = arith.mulf %299, %2 : vector<1x32xf32>
    %301 = arith.addf %298, %300 : vector<1x32xf32>
    %302 = math.tanh %301 : vector<1x32xf32>
    %303 = arith.truncf %302 : vector<1x32xf32> to vector<1x32xbf16>
    %cst_73 = arith.constant dense<0.000000e+00> : vector<1x38xf32>
    %304 = tpu.matmul %303, %0, %cst_73 {dimension_numbers = #tpu.dot_dimension_numbers<[1], [0], [0], [1], [0, 0, 1, 1], [], []>} : vector<1x32xbf16>, vector<32x38xbf16>, vector<1x38xf32> -> vector<1x38xf32>
    %305 = vector.extract_strided_slice %304 {offsets = [0, 0], sizes = [1, 32], strides = [1, 1]} : vector<1x38xf32> to vector<1x32xf32>
    %306 = vector.extract_strided_slice %304 {offsets = [0, 32], sizes = [1, 6], strides = [1, 1]} : vector<1x38xf32> to vector<1x6xf32>
    %307 = arith.addf %306, %1 : vector<1x6xf32>
    %308 = vector.extract_strided_slice %307 {offsets = [0, 0], sizes = [1, 4], strides = [1, 1]} : vector<1x6xf32> to vector<1x4xf32>
    %309 = arith.index_cast %c7_i32 : i32 to index
    %c0_74 = arith.constant 0 : index
    %310 = vector.load %arg6[%309, %c0_74] : memref<8x4xf32, #tpu.memory_space<vmem>>, vector<1x4xf32>
    tpu.vector_store %arg6[%309, %c0_74], %308 {strides = array<i32>} : memref<8x4xf32, #tpu.memory_space<vmem>>, vector<1x4xf32>,
    %311 = vector.extract_strided_slice %307 {offsets = [0, 4], sizes = [1, 2], strides = [1, 1]} : vector<1x6xf32> to vector<1x2xf32>
    %312 = arith.negf %311 : vector<1x2xf32>
    %313 = math.exp %312 : vector<1x2xf32>
    %cst_75 = arith.constant 1.000000e+00 : f32
    %314 = vector.broadcast %cst_75 : f32 to vector<1x2xf32>
    %315 = arith.addf %314, %313 : vector<1x2xf32>
    %316 = arith.divf %314, %315 : vector<1x2xf32>
    %317 = vector.extract_strided_slice %316 {offsets = [0, 0], sizes = [1, 1], strides = [1, 1]} : vector<1x2xf32> to vector<1x1xf32>
    %318 = vector.extract_strided_slice %316 {offsets = [0, 1], sizes = [1, 1], strides = [1, 1]} : vector<1x2xf32> to vector<1x1xf32>
    %cst_76 = arith.constant 1.000000e+00 : f32
    %319 = vector.broadcast %cst_76 : f32 to vector<1x1xf32>
    %320 = arith.subf %319, %317 : vector<1x1xf32>
    %c1_i32_77 = arith.constant 1 : i32
    %321 = tpu.dynamic_rotate %294 by %c1_i32_77 dim 1 : vector<1x128xf32>, i32 -> vector<1x128xf32>
    %322 = vector.shape_cast %318 : vector<1x1xf32> to vector<1x1xf32>
    %323 = vector.broadcast %322 : vector<1x1xf32> to vector<1x128xf32>
    %324 = arith.select %5, %323, %321 : vector<1x128xi1>, vector<1x128xf32>
    %c127_i32_78 = arith.constant 127 : i32
    %325 = tpu.dynamic_rotate %294 by %c127_i32_78 dim 1 : vector<1x128xf32>, i32 -> vector<1x128xf32>
    %cst_79 = arith.constant 0.000000e+00 : f32
    %326 = vector.broadcast %cst_79 : f32 to vector<1x128xf32>
    %327 = arith.select %9, %326, %325 : vector<1x128xi1>, vector<1x128xf32>
    %328 = vector.broadcast %317 : vector<1x1xf32> to vector<1x128xf32>
    %329 = arith.mulf %328, %324 : vector<1x128xf32>
    %330 = vector.broadcast %320 : vector<1x1xf32> to vector<1x128xf32>
    %331 = arith.mulf %330, %327 : vector<1x128xf32>
    %332 = arith.addf %329, %331 : vector<1x128xf32>
    %cst_80 = arith.constant 0.000000e+00 : f32
    %333 = vector.broadcast %cst_80 : f32 to vector<1x128xf32>
    %334 = arith.select %7, %332, %333 : vector<1x128xi1>, vector<1x128xf32>
    %c8_i32 = arith.constant 8 : i32
    %c0_81 = arith.constant 0 : index
    %c0_82 = arith.constant 0 : index
    %335 = vector.load %arg7[%c0_81, %c0_82] : memref<1x32xf32, #tpu.memory_space<vmem>>, vector<1x32xf32>
    tpu.vector_store %arg7[%c0_81, %c0_82], %302 {strides = array<i32>} : memref<1x32xf32, #tpu.memory_space<vmem>>, vector<1x32xf32>,
    %c0_83 = arith.constant 0 : index
    %c0_84 = arith.constant 0 : index
    %336 = vector.load %arg8[%c0_83, %c0_84] : memref<1x128xf32, #tpu.memory_space<vmem>>, vector<1x128xf32>
    tpu.vector_store %arg8[%c0_83, %c0_84], %334 {strides = array<i32>} : memref<1x128xf32, #tpu.memory_space<vmem>>, vector<1x128xf32>,
    return
  }
}

</mosaic_0001>

<bundles_post_ra>
// kernel: srnn_softmax_run_sequence.1
= control target key start
LH: loop header
LB: loop body
LE: loop exit
PB: predicated region body
PF: predicated region fallthrough
CT: control target
= control target key end

     0   :  { %v1099_v1 = vmov 0.0   ;;  %vm1100_vm0 = vmmov 0   ;;  %v1101_v5 = vmov 0   ;;  %s1472_s0 = inlined_call_operand.vmem [shape: f32[8,32], index: 0, kind: input, shape index: {}]   ;;  %s1473_s1 = inlined_call_operand.vmem [shape: f32[1,32], index: 1, kind: input, shape index: {}]   ;;  %s1474_s2 = inlined_call_operand.vmem [shape: f32[1,128], index: 2, kind: input, shape index: {}]   ;;  %s1475_s3 = inlined_call_operand.vmem [shape: bf16[32,38], index: 3, kind: input, shape index: {}]   ;;  %s1476_s4 = inlined_call_operand.vmem [shape: f32[1,6], index: 4, kind: input, shape index: {}]   ;;  %s1477_s5 = inlined_call_operand.vmem [shape: f32[1,32], index: 5, kind: input, shape index: {}]   ;;  %s1478_s6 = inlined_call_operand.vmem [shape: f32[8,4], index: 6, kind: output, shape index: {0}]   ;;  %s1479_s7 = inlined_call_operand.hbm [shape: f32[1,32], index: 7, kind: output, shape index: {1}]   ;;  %s1480_s8 = inlined_call_operand.vmem [shape: f32[1,128], index: 8, kind: output, shape index: {2}]  }
   0x1   :  { %v1157_v0 = vld [vmem:[%s1475_s3] sm:$0xff]   ;;  %911 = vmatprep.subr.bf16.mxu0 %v1099_v1  ;;  %919 = vmatprep.subr.bf16.mxu1 %v1099_v1  ;;  %v1165_v2 = vld [vmem:[%s1475_s3 + $0x8] sm:$0xff]  }
   0x2   :  { %912 = vmatpush3.bf16.msra.mxu0 %v1157_v0  ;;  %915 = vmatprep.mubr.msk.bf16.mxu0 %vm1100_vm0, %v1099_v1  ;;  %v39_v3 = vld [vmem:[%s1473_s1] sm:$0x1] }
   0x3   :  { %v1175_v4 = vld [vmem:[%s1474_s2] sm:$0x1]  ;;  %913 = vmatprep.subr.bf16.mxu0 %v1099_v1  ;;  %993 = vset.pattern.permute.xlu0 %v1101_v5 }
   0x4   :  { %14 = vsyncpa [#allocation3], 0  ;;  %102 = vperm.xlu0 %993, %v1175_v4   ;;  %920 = vmatpush3.bf16.msra.mxu1 %v1157_v0  ;;  %v41_v6 = vpack.c.bf16 %v39_v3, %v39_v3  ;;  %vm54_vm1 = vcmask 261120   ;;  %v868_v7 = vld [vmem:[%s1476_s4] ss:$0 sm:$0xff]  ;;  %s1102_s3 = smov 32   ;;  %v34_v8 = vlaneseq }
   0x5   :  { %921 = vmatprep.subr.bf16.mxu1 %v1099_v1  ;;  %923 = vmatprep.mubr.msk.bf16.mxu1 %vm1100_vm0, %v1099_v1  ;;  %v1201_v13 = vld [vmem:[%s1477_s5] sm:$0x1]  ;;  %v1103_v24 = vmov 37   ;;  %v1104_v25 = vmov 36   ;;  %s1105_s4 = smov 1   ;;  %s1106_s5 = smov 127  }
   0x6   :  { %914 = vmatpush3.bf16.msra.mxu0 %v1165_v2  ;;  %v106_v9 = vshrl.u32 %v34_v8, 7  ;;  %v98_v14 = vld [vmem:[%s1472_s0] sm:$0x1]  ;;  %994 = vset.pattern.permute.xlu1 %v1103_v24  ;;  %v1229_v38 = vand.u32 127, %v34_v8  ;;  %v202_v49 = vld [vmem:[%s1472_s0 + $0x1] sm:$0x1] }
   0x7   :  { %927 = vmatprep.subr.bf16.mxu0 %v1099_v1  ;;  %s1107_s29 = smov 96   ;;  %vm169_vm5 = vcmask 24576   ;;  %vm839_vm6 = vcmask 253952  }
   0x8   :  { %922 = vmatpush3.bf16.msra.mxu1 %v1165_v2  ;;  %161 = vrot.lane.b32.xlu0 %v868_v7, %s1102_s3  ;;  %v107_v10 = vsub.s32 0, %v106_v9  ;;  %vm36_vm2 = vcmp.eq.s32.totalorder %v1229_v38, 0  ;;  %vm38_vm3 = vcmp.ge.s32.totalorder %v1229_v38, 103  ;;  %vm37_vm4 = vcmp.lt.s32.totalorder %v1229_v38, 104 }
   0x9   :  { %916 = vmatmul.mubr.msk.bf16.vlgmr.msra.gmra.mrb[0].mxu0 %vm54_vm1, %v41_v6  ;;  %935 = vmatprep.subr.bf16.mxu1 %v1099_v1 }
   0xa   :  { %928 = vmatpush3.bf16.msra.mxu0 %v1157_v0  ;;  %931 = vmatprep.mubr.msk.bf16.mxu0 %vm1100_vm0, %v1099_v1 }
   0xb   :  { %929 = vmatprep.subr.bf16.mxu0 %v1099_v1  ;;  %996 = vset.pattern.permute.xlu0 %v1104_v25 }
   0xe   :  { %930 = vmatpush3.bf16.msra.mxu0 %v1165_v2 }
   0xf   :  { %943 = vmatprep.subr.bf16.mxu0 %v1099_v1 }
  0x83   :  { %v103_v11 = vpop.permute.xlu0 %102 }
  0x84   :  { %v108_v12 = vrot.slane %v103_v11, %v107_v10 }
  0x86   :  { %v109_v15 = vmul.f32 %v108_v12, %v1201_v13 }
  0x87   :  { %v1216_v26 = vpop.permute.xlu0 %161 }
  0xdc   :  { %v92_v16 = vpop.f32.mrb[0].mxu0 }
  0xdd   :  { %v99_v17 = vadd.f32 %v98_v14, %v92_v16  ;;  %v917_v18 = vpop.f32.mrb[1].mxu0 }
  0xde   :  { %v95_v19 = vpop.f32.mrb[2].mxu0  ;;  %v293_v18 = vld [vmem:[%s1472_s0 + $0x2] sm:$0x1] }
  0xdf   :  { %v110_v20 = vadd.f32 %v109_v15, %v99_v17  ;;  %v918_v21 = vpop.f32.mrb[3].mxu0 }
  0xe1   :  { %1027 = vtanh.f32 %v110_v20 }
  0xeb   :  { %v1028_v22 = vpop.eup %1027 }
  0xec   :  { %v112_v23 = vpack.c.bf16 %v1028_v22, %v1028_v22 }
  0xee   :  { %924 = vmatmul.mubr.msk.bf16.vlgmr.msra.gmra.mrb[0].mxu1 %vm54_vm1, %v112_v23 }
  0xef   :  { %936 = vmatpush3.bf16.msra.mxu1 %v1157_v0  ;;  %939 = vmatprep.mubr.msk.bf16.mxu1 %vm1100_vm0, %v1099_v1 }
  0xf0   :  { %937 = vmatprep.subr.bf16.mxu1 %v1099_v1 }
  0xf3   :  { %938 = vmatpush3.bf16.msra.mxu1 %v1165_v2 }
  0xf4   :  { %951 = vmatprep.subr.bf16.mxu1 %v1099_v1 }
 0x1c1   :  { %v150_v27 = vpop.f32.mrb[0].mxu1 }
 0x1c2   :  { %v1219_v28 = vadd.f32 %v1216_v26, %v150_v27  ;;  %v925_v29 = vpop.f32.mrb[1].mxu1  ;;  %v203_v51 = vadd.f32 %v202_v49, %v150_v27 }
 0x1c3   :  { %v153_v30 = vpop.f32.mrb[2].mxu1 }
 0x1c4   :  { %v869_v31 = vmul.f32 -1.442695, %v1219_v28  ;;  %v926_v32 = vpop.f32.mrb[3].mxu1 }
 0x1c6   :  { %1029 = vpow2.f32 %v869_v31 }
 0x1d0   :  { %v1030_v33 = vpop.eup %1029 }
 0x1d1   :  { %v174_v34 = vadd.f32 1.0, %v1030_v33 }
 0x1d3   :  { %1031 = vrcp.f32 %v174_v34 }
 0x1dd   :  { %v1032_v35 = vpop.eup %1031 }
 0x1de   :  { %182 = vperm.xlu1 %994, %v1032_v35   ;;  %v177_v36 = vsub.f32 1.0, %v1032_v35 }
 0x1e0   :  { %196 = vperm.xlu0 %996, %v177_v36  }
 0x1e2   :  { %995 = vset.pattern.permute.xlu1 %v1104_v25 }
 0x1e3   :  { %190 = vperm.xlu1 %995, %v1032_v35  }
 0x1e4   :  { %997 = vset.pattern.permute.xlu0 %v1101_v5 }
 0x1e7   :  { %178 = vrot.lane.b32.xlu1 %v1175_v4, %s1105_s4 }
 0x1e8   :  { %998 = vset.pattern.permute.xlu1 %v1103_v24 }
 0x1eb   :  { %186 = vrot.lane.b32.xlu1 %v1175_v4, %s1106_s5 }
 0x25d   :  { %v183_v37 = vpop.permute.xlu1 %182 }
 0x25f   :  { %v197_v43 = vpop.permute.xlu0 %196 }
 0x262   :  { %v191_v39 = vpop.permute.xlu1 %190 }
 0x266   :  { %v179_v40 = vpop.permute.xlu1 %178 }
 0x267   :  { %v185_v41 = vsel %vm36_vm2, %v183_v37, %v179_v40 }
 0x268   :  { %v193_v45 = vmul.f32 %v191_v39, %v185_v41 }
 0x26a   :  { %v187_v42 = vpop.permute.xlu1 %186 }
 0x26b   :  { %v188_v44 = vsel %vm38_vm3, 0.0, %v187_v42 }
 0x26c   :  { %v199_v46 = vmul.f32 %v197_v43, %v188_v44 }
 0x26e   :  { %v200_v47 = vadd.f32 %v199_v46, %v193_v45 }
 0x270   :  { %v201_v48 = vsel %vm37_vm4, %v200_v47, 0.0 }
 0x271   :  { %206 = vperm.xlu0 %997, %v201_v48  }
 0x275   :  { %1000 = vset.pattern.permute.xlu0 %v1104_v25 }
 0x2f0   :  { %v207_v50 = vpop.permute.xlu0 %206 }
 0x2f1   :  { %v209_v52 = vmul.f32 %v207_v50, %v1201_v13 }
 0x2f3   :  { %v210_v53 = vadd.f32 %v209_v52, %v203_v51  ;;  %v384_v51 = vld [vmem:[%s1472_s0 + $0x3] sm:$0x1] }
 0x2f5   :  { %1033 = vtanh.f32 %v210_v53 }
 0x2ff   :  { %v1034_v54 = vpop.eup %1033 }
 0x300   :  { %v212_v55 = vpack.c.bf16 %v1034_v54, %v1034_v54 }
 0x302   :  { %932 = vmatmul.mubr.msk.bf16.vlgmr.msra.gmra.mrb[4].mxu0 %vm54_vm1, %v212_v55 }
 0x303   :  { %944 = vmatpush3.bf16.msra.mxu0 %v1157_v0  ;;  %947 = vmatprep.mubr.msk.bf16.mxu0 %vm1100_vm0, %v1099_v1 }
 0x304   :  { %945 = vmatprep.subr.bf16.mxu0 %v1099_v1 }
 0x307   :  { %946 = vmatpush3.bf16.msra.mxu0 %v1165_v2 }
 0x308   :  { %959 = vmatprep.subr.bf16.mxu0 %v1099_v1 }
 0x3d5   :  { %v250_v56 = vpop.f32.mrb[4].mxu0 }
 0x3d6   :  { %v1253_v57 = vadd.f32 %v250_v56, %v1216_v26  ;;  %v933_v58 = vpop.f32.mrb[5].mxu0  ;;  %v294_v20 = vadd.f32 %v293_v18, %v250_v56 }
 0x3d7   :  { %v253_v59 = vpop.f32.mrb[6].mxu0 }
 0x3d8   :  { %v871_v60 = vmul.f32 -1.442695, %v1253_v57  ;;  %v934_v61 = vpop.f32.mrb[7].mxu0 }
 0x3da   :  { %1035 = vpow2.f32 %v871_v60 }
 0x3e4   :  { %v1036_v62 = vpop.eup %1035 }
 0x3e5   :  { %v265_v63 = vadd.f32 1.0, %v1036_v62 }
 0x3e7   :  { %1037 = vrcp.f32 %v265_v63 }
 0x3f1   :  { %v1038_v3 = vpop.eup %1037 }
 0x3f2   :  { %273 = vperm.xlu1 %998, %v1038_v3   ;;  %v268_v4 = vsub.f32 1.0, %v1038_v3 }
 0x3f4   :  { %287 = vperm.xlu0 %1000, %v268_v4  }
 0x3f6   :  { %999 = vset.pattern.permute.xlu1 %v1104_v25 }
 0x3f7   :  { %281 = vperm.xlu1 %999, %v1038_v3  }
 0x3f8   :  { %1001 = vset.pattern.permute.xlu0 %v1101_v5 }
 0x3fb   :  { %269 = vrot.lane.b32.xlu1 %v201_v48, %s1105_s4 }
 0x3fc   :  { %1002 = vset.pattern.permute.xlu1 %v1103_v24 }
 0x3ff   :  { %277 = vrot.lane.b32.xlu1 %v201_v48, %s1106_s5 }
 0x471   :  { %v274_v6 = vpop.permute.xlu1 %273 }
 0x473   :  { %v288_v11 = vpop.permute.xlu0 %287 }
 0x476   :  { %v282_v7 = vpop.permute.xlu1 %281 }
 0x47a   :  { %v270_v8 = vpop.permute.xlu1 %269 }
 0x47b   :  { %v276_v9 = vsel %vm36_vm2, %v274_v6, %v270_v8 }
 0x47c   :  { %v284_v14 = vmul.f32 %v282_v7, %v276_v9 }
 0x47e   :  { %v278_v10 = vpop.permute.xlu1 %277 }
 0x47f   :  { %v279_v12 = vsel %vm38_vm3, 0.0, %v278_v10 }
 0x480   :  { %v290_v15 = vmul.f32 %v288_v11, %v279_v12 }
 0x482   :  { %v291_v16 = vadd.f32 %v290_v15, %v284_v14 }
 0x484   :  { %v292_v17 = vsel %vm37_vm4, %v291_v16, 0.0 }
 0x485   :  { %297 = vperm.xlu0 %1001, %v292_v17  }
 0x489   :  { %1004 = vset.pattern.permute.xlu0 %v1104_v25 }
 0x504   :  { %v298_v19 = vpop.permute.xlu0 %297 }
 0x505   :  { %v300_v21 = vmul.f32 %v298_v19, %v1201_v13 }
 0x507   :  { %v301_v22 = vadd.f32 %v300_v21, %v294_v20  ;;  %v475_v21 = vld [vmem:[%s1472_s0 + $0x4] sm:$0x1] }
 0x509   :  { %1039 = vtanh.f32 %v301_v22 }
 0x513   :  { %v1040_v23 = vpop.eup %1039 }
 0x514   :  { %v303_v27 = vpack.c.bf16 %v1040_v23, %v1040_v23 }
 0x516   :  { %940 = vmatmul.mubr.msk.bf16.vlgmr.msra.gmra.mrb[4].mxu1 %vm54_vm1, %v303_v27 }
 0x517   :  { %952 = vmatpush3.bf16.msra.mxu1 %v1157_v0  ;;  %955 = vmatprep.mubr.msk.bf16.mxu1 %vm1100_vm0, %v1099_v1 }
 0x518   :  { %953 = vmatprep.subr.bf16.mxu1 %v1099_v1 }
 0x51b   :  { %954 = vmatpush3.bf16.msra.mxu1 %v1165_v2 }
 0x51c   :  { %967 = vmatprep.subr.bf16.mxu1 %v1099_v1 }
 0x5e9   :  { %v341_v29 = vpop.f32.mrb[4].mxu1 }
 0x5ea   :  { %v1280_v30 = vadd.f32 %v341_v29, %v1216_v26  ;;  %v941_v31 = vpop.f32.mrb[5].mxu1  ;;  %v385_v53 = vadd.f32 %v384_v51, %v341_v29 }
 0x5eb   :  { %v344_v32 = vpop.f32.mrb[6].mxu1 }
 0x5ec   :  { %v873_v33 = vmul.f32 -1.442695, %v1280_v30  ;;  %v942_v34 = vpop.f32.mrb[7].mxu1 }
 0x5ee   :  { %1041 = vpow2.f32 %v873_v33 }
 0x5f8   :  { %v1042_v35 = vpop.eup %1041 }
 0x5f9   :  { %v356_v36 = vadd.f32 1.0, %v1042_v35 }
 0x5fb   :  { %1043 = vrcp.f32 %v356_v36 }
 0x605   :  { %v1044_v37 = vpop.eup %1043 }
 0x606   :  { %364 = vperm.xlu1 %1002, %v1044_v37   ;;  %v359_v39 = vsub.f32 1.0, %v1044_v37 }
 0x608   :  { %378 = vperm.xlu0 %1004, %v359_v39  }
 0x60a   :  { %1003 = vset.pattern.permute.xlu1 %v1104_v25 }
 0x60b   :  { %372 = vperm.xlu1 %1003, %v1044_v37  }
 0x60c   :  { %1005 = vset.pattern.permute.xlu0 %v1101_v5 }
 0x60f   :  { %360 = vrot.lane.b32.xlu1 %v292_v17, %s1105_s4 }
 0x610   :  { %1006 = vset.pattern.permute.xlu1 %v1103_v24 }
 0x613   :  { %368 = vrot.lane.b32.xlu1 %v292_v17, %s1106_s5 }
 0x685   :  { %v365_v40 = vpop.permute.xlu1 %364 }
 0x687   :  { %v379_v45 = vpop.permute.xlu0 %378 }
 0x68a   :  { %v373_v41 = vpop.permute.xlu1 %372 }
 0x68e   :  { %v361_v42 = vpop.permute.xlu1 %360 }
 0x68f   :  { %v367_v43 = vsel %vm36_vm2, %v365_v40, %v361_v42 }
 0x690   :  { %v375_v47 = vmul.f32 %v373_v41, %v367_v43 }
 0x692   :  { %v369_v44 = vpop.permute.xlu1 %368 }
 0x693   :  { %v370_v46 = vsel %vm38_vm3, 0.0, %v369_v44 }
 0x694   :  { %v381_v48 = vmul.f32 %v379_v45, %v370_v46 }
 0x696   :  { %v382_v49 = vadd.f32 %v381_v48, %v375_v47 }
 0x698   :  { %v383_v50 = vsel %vm37_vm4, %v382_v49, 0.0 }
 0x699   :  { %388 = vperm.xlu0 %1005, %v383_v50  }
 0x69d   :  { %1008 = vset.pattern.permute.xlu0 %v1104_v25 }
 0x718   :  { %v389_v52 = vpop.permute.xlu0 %388 }
 0x719   :  { %v391_v54 = vmul.f32 %v389_v52, %v1201_v13 }
 0x71b   :  { %v392_v55 = vadd.f32 %v391_v54, %v385_v53 }
 0x71d   :  { %1045 = vtanh.f32 %v392_v55  ;;  %v566_v55 = vld [vmem:[%s1472_s0 + $0x5] sm:$0x1] }
 0x727   :  { %v1046_v56 = vpop.eup %1045 }
 0x728   :  { %v394_v58 = vpack.c.bf16 %v1046_v56, %v1046_v56 }
 0x72a   :  { %948 = vmatmul.mubr.msk.bf16.vlgmr.msra.gmra.mrb[8].mxu0 %vm54_vm1, %v394_v58 }
 0x72b   :  { %960 = vmatpush3.bf16.msra.mxu0 %v1157_v0  ;;  %963 = vmatprep.mubr.msk.bf16.mxu0 %vm1100_vm0, %v1099_v1 }
 0x72c   :  { %961 = vmatprep.subr.bf16.mxu0 %v1099_v1 }
 0x72f   :  { %962 = vmatpush3.bf16.msra.mxu0 %v1165_v2 }
 0x730   :  { %975 = vmatprep.subr.bf16.mxu0 %v1099_v1 }
 0x7fd   :  { %v432_v59 = vpop.f32.mrb[8].mxu0 }
 0x7fe   :  { %v1307_v60 = vadd.f32 %v432_v59, %v1216_v26  ;;  %v949_v61 = vpop.f32.mrb[9].mxu0  ;;  %v476_v23 = vadd.f32 %v475_v21, %v432_v59 }
 0x7ff   :  { %v435_v62 = vpop.f32.mrb[10].mxu0 }
 0x800   :  { %v875_v63 = vmul.f32 -1.442695, %v1307_v60  ;;  %v950_v3 = vpop.f32.mrb[11].mxu0 }
 0x802   :  { %1047 = vpow2.f32 %v875_v63 }
 0x80c   :  { %v1048_v4 = vpop.eup %1047 }
 0x80d   :  { %v447_v6 = vadd.f32 1.0, %v1048_v4 }
 0x80f   :  { %1049 = vrcp.f32 %v447_v6 }
 0x819   :  { %v1050_v7 = vpop.eup %1049 }
 0x81a   :  { %455 = vperm.xlu1 %1006, %v1050_v7   ;;  %v450_v8 = vsub.f32 1.0, %v1050_v7 }
 0x81c   :  { %469 = vperm.xlu0 %1008, %v450_v8  }
 0x81e   :  { %1007 = vset.pattern.permute.xlu1 %v1104_v25 }
 0x81f   :  { %463 = vperm.xlu1 %1007, %v1050_v7  }
 0x820   :  { %1009 = vset.pattern.permute.xlu0 %v1101_v5 }
 0x823   :  { %451 = vrot.lane.b32.xlu1 %v383_v50, %s1105_s4 }
 0x824   :  { %1010 = vset.pattern.permute.xlu1 %v1103_v24 }
 0x827   :  { %459 = vrot.lane.b32.xlu1 %v383_v50, %s1106_s5 }
 0x899   :  { %v456_v9 = vpop.permute.xlu1 %455 }
 0x89b   :  { %v470_v15 = vpop.permute.xlu0 %469 }
 0x89e   :  { %v464_v10 = vpop.permute.xlu1 %463 }
 0x8a2   :  { %v452_v11 = vpop.permute.xlu1 %451 }
 0x8a3   :  { %v458_v12 = vsel %vm36_vm2, %v456_v9, %v452_v11 }
 0x8a4   :  { %v466_v17 = vmul.f32 %v464_v10, %v458_v12 }
 0x8a6   :  { %v460_v14 = vpop.permute.xlu1 %459 }
 0x8a7   :  { %v461_v16 = vsel %vm38_vm3, 0.0, %v460_v14 }
 0x8a8   :  { %v472_v18 = vmul.f32 %v470_v15, %v461_v16 }
 0x8aa   :  { %v473_v19 = vadd.f32 %v472_v18, %v466_v17 }
 0x8ac   :  { %v474_v20 = vsel %vm37_vm4, %v473_v19, 0.0 }
 0x8ad   :  { %479 = vperm.xlu0 %1009, %v474_v20  }
 0x8b1   :  { %1012 = vset.pattern.permute.xlu0 %v1104_v25 }
 0x92c   :  { %v480_v22 = vpop.permute.xlu0 %479 }
 0x92d   :  { %v482_v27 = vmul.f32 %v480_v22, %v1201_v13 }
 0x92f   :  { %v483_v29 = vadd.f32 %v482_v27, %v476_v23  ;;  %v657_v23 = vld [vmem:[%s1472_s0 + $0x6] sm:$0x1] }
 0x931   :  { %1051 = vtanh.f32 %v483_v29 }
 0x93b   :  { %v1052_v31 = vpop.eup %1051 }
 0x93c   :  { %v485_v32 = vpack.c.bf16 %v1052_v31, %v1052_v31 }
 0x93e   :  { %956 = vmatmul.mubr.msk.bf16.vlgmr.msra.gmra.mrb[8].mxu1 %vm54_vm1, %v485_v32 }
 0x93f   :  { %968 = vmatpush3.bf16.msra.mxu1 %v1157_v0  ;;  %971 = vmatprep.mubr.msk.bf16.mxu1 %vm1100_vm0, %v1099_v1 }
 0x940   :  { %969 = vmatprep.subr.bf16.mxu1 %v1099_v1 }
 0x943   :  { %970 = vmatpush3.bf16.msra.mxu1 %v1165_v2 }
 0xa11   :  { %v523_v33 = vpop.f32.mrb[8].mxu1 }
 0xa12   :  { %v1333_v34 = vadd.f32 %v523_v33, %v1216_v26  ;;  %v957_v35 = vpop.f32.mrb[9].mxu1  ;;  %v567_v58 = vadd.f32 %v566_v55, %v523_v33 }
 0xa13   :  { %v526_v36 = vpop.f32.mrb[10].mxu1 }
 0xa14   :  { %v877_v37 = vmul.f32 -1.442695, %v1333_v34  ;;  %v958_v39 = vpop.f32.mrb[11].mxu1 }
 0xa16   :  { %1053 = vpow2.f32 %v877_v37 }
 0xa20   :  { %v1054_v40 = vpop.eup %1053 }
 0xa21   :  { %v538_v41 = vadd.f32 1.0, %v1054_v40 }
 0xa23   :  { %1055 = vrcp.f32 %v538_v41 }
 0xa2d   :  { %v1056_v42 = vpop.eup %1055 }
 0xa2e   :  { %546 = vperm.xlu1 %1010, %v1056_v42   ;;  %v541_v43 = vsub.f32 1.0, %v1056_v42 }
 0xa30   :  { %560 = vperm.xlu0 %1012, %v541_v43  }
 0xa32   :  { %1011 = vset.pattern.permute.xlu1 %v1104_v25 }
 0xa33   :  { %554 = vperm.xlu1 %1011, %v1056_v42  }
 0xa34   :  { %1013 = vset.pattern.permute.xlu0 %v1101_v5 }
 0xa37   :  { %542 = vrot.lane.b32.xlu1 %v474_v20, %s1105_s4 }
 0xa38   :  { %1014 = vset.pattern.permute.xlu1 %v1103_v24 }
 0xa3b   :  { %550 = vrot.lane.b32.xlu1 %v474_v20, %s1106_s5 }
 0xaad   :  { %v547_v44 = vpop.permute.xlu1 %546 }
 0xaaf   :  { %v561_v49 = vpop.permute.xlu0 %560 }
 0xab2   :  { %v555_v45 = vpop.permute.xlu1 %554 }
 0xab6   :  { %v543_v46 = vpop.permute.xlu1 %542 }
 0xab7   :  { %v549_v47 = vsel %vm36_vm2, %v547_v44, %v543_v46 }
 0xab8   :  { %v557_v51 = vmul.f32 %v555_v45, %v549_v47 }
 0xaba   :  { %v551_v48 = vpop.permute.xlu1 %550 }
 0xabb   :  { %v552_v50 = vsel %vm38_vm3, 0.0, %v551_v48 }
 0xabc   :  { %v563_v52 = vmul.f32 %v561_v49, %v552_v50 }
 0xabe   :  { %v564_v53 = vadd.f32 %v563_v52, %v557_v51 }
 0xac0   :  { %v565_v54 = vsel %vm37_vm4, %v564_v53, 0.0 }
 0xac1   :  { %570 = vperm.xlu0 %1013, %v565_v54  }
 0xac5   :  { %1016 = vset.pattern.permute.xlu0 %v1104_v25 }
 0xb40   :  { %v571_v56 = vpop.permute.xlu0 %570 }
 0xb41   :  { %v573_v59 = vmul.f32 %v571_v56, %v1201_v13  ;;  %v748_v56 = vld [vmem:[%s1472_s0 + $0x7] sm:$0x1]  ;;  %s1108_s0 = smov [#allocation2]  }
 0xb42   :  { %s850_s13 = sshll.u32 %s1108_s0, 4  ;;  %s851_s13 = int_to_ptr.vmem [resolvable:$true] %s850_s13 }
 0xb43   :  { %v574_v61 = vadd.f32 %v573_v59, %v567_v58  ;;  %s1075_s14 = scalar_lea.vmem %s851_s13, 16  ;;  %s1079_s15 = scalar_lea.vmem %s851_s13, 32 }
 0xb44   :  { %p1076_p0 = scmp.ne.s32.totalorder %s851_s13, %s1075_s14  ;;  %p1080_p1 = scmp.lt.s32.totalorder %s851_s13, %s851_s13 }
 0xb45   :  { %1057 = vtanh.f32 %v574_v61  ;;  %p1081_p2 = scmp.lt.s32.totalorder %s1079_s15, %s1075_s14 }
 0xb47   :  { %p1082_p3 = por %p1081_p2, %p1080_p1 }
 0xb49   :  { %p1083_p4 = pnand %p1082_p3, %p1076_p0 }
 0xb4f   :  { %v1058_v62 = vpop.eup %1057 }
 0xb50   :  { %v576_v63 = vpack.c.bf16 %v1058_v62, %v1058_v62 }
 0xb52   :  { %964 = vmatmul.mubr.msk.bf16.vlgmr.msra.gmra.mrb[12].mxu0 %vm54_vm1, %v576_v63 }
 0xb53   :  { %976 = vmatpush3.bf16.msra.mxu0 %v1157_v0  ;;  %979 = vmatprep.mubr.msk.bf16.mxu0 %vm1100_vm0, %v1099_v1 }
 0xb54   :  { %977 = vmatprep.subr.bf16.mxu0 %v1099_v1 }
 0xb57   :  { %978 = vmatpush3.bf16.msra.mxu0 %v1165_v2 }
 0xc25   :  { %v614_v3 = vpop.f32.mrb[12].mxu0 }
 0xc26   :  { %v1359_v4 = vadd.f32 %v614_v3, %v1216_v26  ;;  %v965_v6 = vpop.f32.mrb[13].mxu0  ;;  %v658_v29 = vadd.f32 %v657_v23, %v614_v3 }
 0xc27   :  { %v617_v7 = vpop.f32.mrb[14].mxu0 }
 0xc28   :  { %v879_v8 = vmul.f32 -1.442695, %v1359_v4  ;;  %v966_v9 = vpop.f32.mrb[15].mxu0 }
 0xc2a   :  { %1059 = vpow2.f32 %v879_v8 }
 0xc34   :  { %v1060_v10 = vpop.eup %1059 }
 0xc35   :  { %v629_v11 = vadd.f32 1.0, %v1060_v10 }
 0xc37   :  { %1061 = vrcp.f32 %v629_v11 }
 0xc41   :  { %v1062_v0 = vpop.eup %1061 }
 0xc42   :  { %637 = vperm.xlu1 %1014, %v1062_v0   ;;  %v632_v12 = vsub.f32 1.0, %v1062_v0 }
 0xc44   :  { %651 = vperm.xlu0 %1016, %v632_v12  }
 0xc46   :  { %1015 = vset.pattern.permute.xlu1 %v1104_v25 }
 0xc47   :  { %645 = vperm.xlu1 %1015, %v1062_v0  }
 0xc48   :  { %1017 = vset.pattern.permute.xlu0 %v1101_v5 }
 0xc4b   :  { %633 = vrot.lane.b32.xlu1 %v565_v54, %s1105_s4 }
 0xc4c   :  { %1018 = vset.pattern.permute.xlu1 %v1103_v24 }
 0xc4f   :  { %641 = vrot.lane.b32.xlu1 %v565_v54, %s1106_s5 }
 0xcc1   :  { %v638_v1 = vpop.permute.xlu1 %637 }
 0xcc3   :  { %v652_v17 = vpop.permute.xlu0 %651 }
 0xcc6   :  { %v646_v2 = vpop.permute.xlu1 %645 }
 0xcca   :  { %v634_v14 = vpop.permute.xlu1 %633 }
 0xccb   :  { %v640_v15 = vsel %vm36_vm2, %v638_v1, %v634_v14 }
 0xccc   :  { %v648_v19 = vmul.f32 %v646_v2, %v640_v15 }
 0xcce   :  { %v642_v16 = vpop.permute.xlu1 %641 }
 0xccf   :  { %v643_v18 = vsel %vm38_vm3, 0.0, %v642_v16 }
 0xcd0   :  { %v654_v20 = vmul.f32 %v652_v17, %v643_v18 }
 0xcd2   :  { %v655_v21 = vadd.f32 %v654_v20, %v648_v19 }
 0xcd4   :  { %v656_v22 = vsel %vm37_vm4, %v655_v21, 0.0 }
 0xcd5   :  { %661 = vperm.xlu0 %1017, %v656_v22  }
 0xcd9   :  { %1020 = vset.pattern.permute.xlu0 %v1104_v25 }
 0xd54   :  { %v662_v27 = vpop.permute.xlu0 %661 }
 0xd55   :  { %v664_v31 = vmul.f32 %v662_v27, %v1201_v13 }
 0xd57   :  { %v665_v32 = vadd.f32 %v664_v31, %v658_v29 }
 0xd59   :  { %1063 = vtanh.f32 %v665_v32 }
 0xd63   :  { %v1064_v33 = vpop.eup %1063 }
 0xd64   :  { %v667_v35 = vpack.c.bf16 %v1064_v33, %v1064_v33 }
 0xd66   :  { %972 = vmatmul.mubr.msk.bf16.vlgmr.msra.gmra.mrb[12].mxu1 %vm54_vm1, %v667_v35 }
 0xe39   :  { %v705_v36 = vpop.f32.mrb[12].mxu1 }
 0xe3a   :  { %v1380_v37 = vadd.f32 %v705_v36, %v1216_v26  ;;  %v973_v39 = vpop.f32.mrb[13].mxu1  ;;  %v749_v59 = vadd.f32 %v748_v56, %v705_v36 }
 0xe3b   :  { %v708_v40 = vpop.f32.mrb[14].mxu1 }
 0xe3c   :  { %v881_v41 = vmul.f32 -1.442695, %v1380_v37  ;;  %v974_v42 = vpop.f32.mrb[15].mxu1 }
 0xe3e   :  { %1065 = vpow2.f32 %v881_v41 }
 0xe48   :  { %v1066_v43 = vpop.eup %1065 }
 0xe49   :  { %v720_v44 = vadd.f32 1.0, %v1066_v43 }
 0xe4b   :  { %1067 = vrcp.f32 %v720_v44 }
 0xe55   :  { %v1068_v45 = vpop.eup %1067 }
 0xe56   :  { %728 = vperm.xlu1 %1018, %v1068_v45   ;;  %v723_v46 = vsub.f32 1.0, %v1068_v45 }
 0xe58   :  { %742 = vperm.xlu0 %1020, %v723_v46  }
 0xe5a   :  { %1019 = vset.pattern.permute.xlu1 %v1104_v25 }
 0xe5b   :  { %736 = vperm.xlu1 %1019, %v1068_v45  }
 0xe5c   :  { %1021 = vset.pattern.permute.xlu0 %v1101_v5 }
 0xe5f   :  { %724 = vrot.lane.b32.xlu1 %v656_v22, %s1105_s4 }
 0xe60   :  { %1022 = vset.pattern.permute.xlu1 %v1103_v24 }
 0xe63   :  { %732 = vrot.lane.b32.xlu1 %v656_v22, %s1106_s5 }
 0xe67   :  { %258 = vrot.lane.b32.xlu1 %v1253_v57, %s1107_s29 }
 0xed5   :  { %v729_v47 = vpop.permute.xlu1 %728 }
 0xed7   :  { %v743_v52 = vpop.permute.xlu0 %742 }
 0xeda   :  { %v737_v48 = vpop.permute.xlu1 %736 }
 0xede   :  { %v725_v49 = vpop.permute.xlu1 %724 }
 0xedf   :  { %v731_v50 = vsel %vm36_vm2, %v729_v47, %v725_v49 }
 0xee0   :  { %v739_v53 = vmul.f32 %v737_v48, %v731_v50 }
 0xee2   :  { %v733_v51 = vpop.permute.xlu1 %732 }
 0xee3   :  { %v734_v5 = vsel %vm38_vm3, 0.0, %v733_v51 }
 0xee4   :  { %v745_v54 = vmul.f32 %v743_v52, %v734_v5 }
 0xee6   :  { %v746_v24 = vadd.f32 %v745_v54, %v739_v53  ;;  %v259_v55 = vpop.permute.xlu1 %258 }
 0xee7   :  { %261 = vst.msk [vmem:[%s1478_s6 + $0x1] sm:$0x1] %vm169_vm5, %v259_v55 }
 0xee8   :  { %v747_v57 = vsel %vm37_vm4, %v746_v24, 0.0 }
 0xee9   :  { %815 = vrot.lane.b32.xlu1 %v747_v57, %s1105_s4  ;;  %752 = vperm.xlu0 %1021, %v747_v57  }
 0xeed   :  { %823 = vrot.lane.b32.xlu1 %v747_v57, %s1106_s5  ;;  %166 = vrot.lane.b32.xlu0 %v1219_v28, %s1107_s29 }
 0xeee   :  { %1024 = vset.pattern.permute.xlu0 %v1104_v25 }
 0xef1   :  { %349 = vrot.lane.b32.xlu0 %v1280_v30, %s1107_s29 }
 0xf68   :  { %v753_v58 = vpop.permute.xlu0 %752 }
 0xf69   :  { %v755_v61 = vmul.f32 %v753_v58, %v1201_v13 }
 0xf6b   :  { %v756_v62 = vadd.f32 %v755_v61, %v749_v59 }
 0xf6c   :  { %v167_v63 = vpop.permute.xlu0 %166 }
 0xf6d   :  { %1069 = vtanh.f32 %v756_v62  ;;  %170 = vst.msk [vmem:[%s1478_s6] sm:$0x1] %vm169_vm5, %v167_v63 }
 0xf70   :  { %v350_v28 = vpop.permute.xlu0 %349 }
 0xf71   :  { %352 = vst.msk [vmem:[%s1478_s6 + $0x2] sm:$0x1] %vm169_vm5, %v350_v28 }
 0xf77   :  { %v1070_v30 = vpop.eup %1069 }
 0xf78   :  { %v758_v3 = vpack.c.bf16 %v1070_v30, %v1070_v30  ;;  %840 = vst.msk [vmem:[#allocation2] sm:$0x1] %vm839_vm6, %v1070_v30 }
 0xf7a   :  { %980 = vmatmul.mubr.msk.bf16.vlgmr.msra.gmra.mrb[16].mxu0 %vm54_vm1, %v758_v3 }
0x104d   :  { %v796_v13 = vpop.f32.mrb[16].mxu0 }
0x104e   :  { %v802_v6 = vadd.f32 %v796_v13, %v1216_v26  ;;  %v981_v7 = vpop.f32.mrb[17].mxu0 }
0x104f   :  { %v799_v8 = vpop.f32.mrb[18].mxu0 }
0x1050   :  { %v883_v9 = vmul.f32 -1.442695, %v802_v6  ;;  %v982_v10 = vpop.f32.mrb[19].mxu0 }
0x1052   :  { %1071 = vpow2.f32 %v883_v9 }
0x105c   :  { %v1072_v11 = vpop.eup %1071 }
0x105d   :  { %v811_v0 = vadd.f32 1.0, %v1072_v11 }
0x105f   :  { %1073 = vrcp.f32 %v811_v0 }
0x1069   :  { %v1074_v12 = vpop.eup %1073 }
0x106a   :  { %819 = vperm.xlu1 %1022, %v1074_v12   ;;  %v814_v1 = vsub.f32 1.0, %v1074_v12 }
0x106c   :  { %833 = vperm.xlu0 %1024, %v814_v1  }
0x106e   :  { %1023 = vset.pattern.permute.xlu1 %v1104_v25 }
0x106f   :  { %827 = vperm.xlu1 %1023, %v1074_v12  }
0x1070   :  { %531 = vrot.lane.b32.xlu0 %v1333_v34, %s1107_s29 }
0x1073   :  { %440 = vrot.lane.b32.xlu1 %v1307_v60, %s1107_s29 }
0x1074   :  { %713 = vrot.lane.b32.xlu0 %v1380_v37, %s1107_s29 }
0x1077   :  { %622 = vrot.lane.b32.xlu1 %v1359_v4, %s1107_s29 }
0x107b   :  { %804 = vrot.lane.b32.xlu1 %v802_v6, %s1107_s29 }
0x107c   :  { %1086 = shalt.err (!%p1083_p4)
}
0x107d   :  { %s1087_s5 = scalar_lea.hbm %s1479_s7, 16 }
0x107e   :  { %p1088_p5 = scmp.ne.s32.totalorder %s1479_s7, %s1087_s5  ;;  %p1091_p6 = scmp.lt.u32.totalorder %s1087_s5, %s1479_s7 }
0x1080   :  { %p1093_p7 = pnand %p1091_p6, %p1088_p5 }
0x1082   :  { %1096 = shalt.err (!%p1093_p7)
}
0x1083   :  { %853 = dma.vmem_to_hbm [thread:$0]  %s851_s13, 16, %s1479_s7, [#allocation3]   ;;  %v816_v25 = vpop.permute.xlu1 %815 }
0x1087   :  { %v824_v26 = vpop.permute.xlu1 %823 }
0x1088   :  { %v825_v4 = vsel %vm38_vm3, 0.0, %v824_v26 }
0x10e9   :  { %v820_v60 = vpop.permute.xlu1 %819 }
0x10ea   :  { %v822_v2 = vsel %vm36_vm2, %v820_v60, %v816_v25 }
0x10eb   :  { %v834_v34 = vpop.permute.xlu0 %833 }
0x10ec   :  { %v836_v15 = vmul.f32 %v834_v34, %v825_v4 }
0x10ee   :  { %v828_v14 = vpop.permute.xlu1 %827 }
0x10ef   :  { %v830_v16 = vmul.f32 %v828_v14, %v822_v2  ;;  %v532_v17 = vpop.permute.xlu0 %531 }
0x10f0   :  { %534 = vst.msk [vmem:[%s1478_s6 + $0x4] sm:$0x1] %vm169_vm5, %v532_v17 }
0x10f1   :  { %v837_v18 = vadd.f32 %v836_v15, %v830_v16 }
0x10f2   :  { %v441_v19 = vpop.permute.xlu1 %440 }
0x10f3   :  { %v838_v20 = vsel %vm37_vm4, %v837_v18, 0.0  ;;  %443 = vst.msk [vmem:[%s1478_s6 + $0x3] sm:$0x1] %vm169_vm5, %v441_v19  ;;  %v714_v21 = vpop.permute.xlu0 %713 }
0x10f4   :  { %841 = vst [vmem:[%s1480_s8] sm:$0x1] %v838_v20  ;;  %716 = vst.msk [vmem:[%s1478_s6 + $0x6] sm:$0x1] %vm169_vm5, %v714_v21 }
0x10f6   :  { %v623_v22 = vpop.permute.xlu1 %622 }
0x10f7   :  { %625 = vst.msk [vmem:[%s1478_s6 + $0x5] sm:$0x1] %vm169_vm5, %v623_v22 }
0x10fa   :  { %v805_v38 = vpop.permute.xlu1 %804 }
0x10fb   :  { %807 = vst.msk [vmem:[%s1478_s6 + $0x7] sm:$0x1] %vm169_vm5, %v805_v38 }
0x10fc   :  { %1097 = dma.done.wait [#allocation3], 16  }
0x10fd   :  { %1098 = vsyncadd [#allocation3], 4294967280 }
0x10fe   :  { %863 = vsyncpa [#allocation3], 1 }

</bundles_post_ra>
